<compile_context>
chip_gen: v7x
topology: tpu7x:2x2x1
jax: 0.10.0
libtpu: 0.0.40
codegen_flags: <defaults>
</compile_context>

<pallas_src>
import numpy as np
import jax
import jax.numpy as jnp
from jax import lax
from jax.experimental import pallas as pl
from jax.experimental.pallas import tpu as pltpu

# ----------------------- scaled-down MelSpectrogramConfig -----------------------
SAMPLE_RATE = 16000
N_FFT = 64
HOP = 16
WIN = 64
N_MELS = 16
N_FREQ = N_FFT // 2 + 1
MEL_FMIN = 0.0
MEL_FMAX = SAMPLE_RATE / 2.0
LOG_CLAMP = 1e-5

# padded sizes for MXU / lane alignment
N_FFT_PAD = 128           # K dim of the DFT matmul, padded to a lane multiple
N_FREQ_PAD = 128          # real / imag each padded to 128 columns
# Frame tile: multiple of 128 so the spectrogram block stays lane-aligned.
# For production n_fft=1024 audio raise to ~512 on v7x (64 MiB VMEM) or
# 1024-2048 on v5e/v6e (128 MiB), optionally with bf16 frames + f32 accumulate,
# and set pltpu.CompilerParams(vmem_limit_bytes=...) accordingly.
TILE_M = 128

_VMEM = pltpu.MemorySpace.VMEM
_SMEM = pltpu.MemorySpace.SMEM


def _hz_to_mel(f):
    return 2595.0 * np.log10(1.0 + f / 700.0)


def _mel_to_hz(m):
    return 700.0 * (10.0 ** (m / 2595.0) - 1.0)


def _build_constants():
    n = np.arange(N_FFT)
    # periodic hann window (torch.hann_window default)
    hann = 0.5 * (1.0 - np.cos(2.0 * np.pi * n / N_FFT))
    k = np.arange(N_FREQ)
    ang = -2.0 * np.pi * np.outer(n, k) / N_FFT                  # [n_fft, n_freq]
    dft_real = np.cos(ang) * hann[:, None]                        # window folded in
    dft_imag = np.sin(ang) * hann[:, None]

    # combined, padded DFT matrix: [n_fft_pad, 2*n_freq_pad] = (128, 256)
    wdft = np.zeros((N_FFT_PAD, 2 * N_FREQ_PAD), dtype=np.float64)
    wdft[:N_FFT, :N_FREQ] = dft_real
    wdft[:N_FFT, N_FREQ_PAD:N_FREQ_PAD + N_FREQ] = dft_imag

    # triangular (HTK-style, unnormalized) mel filterbank, transposed+padded:
    # [n_mels, n_freq_pad] = (16, 128)
    mels = np.linspace(_hz_to_mel(MEL_FMIN), _hz_to_mel(MEL_FMAX), N_MELS + 2)
    hz = _mel_to_hz(mels)
    fft_freqs = np.linspace(0.0, SAMPLE_RATE / 2.0, N_FREQ)
    fb = np.zeros((N_FREQ, N_MELS), dtype=np.float64)
    for m in range(N_MELS):
        f_l, f_c, f_r = hz[m], hz[m + 1], hz[m + 2]
        left = (fft_freqs - f_l) / max(f_c - f_l, 1e-8)
        right = (f_r - fft_freqs) / max(f_r - f_c, 1e-8)
        fb[:, m] = np.maximum(0.0, np.minimum(left, right))
    melfb_t = np.zeros((N_MELS, N_FREQ_PAD), dtype=np.float64)
    melfb_t[:, :N_FREQ] = fb.T

    to32 = lambda a: jnp.asarray(a, dtype=jnp.float32)
    return to32(wdft), to32(melfb_t)


W_DFT, MEL_FB_T = _build_constants()
_LOG_PAD = float(np.log(LOG_CLAMP))   # value log-mel takes on zero-padded frames


# --------------------------------- Pallas kernels --------------------------------
def _mel_l1_kernel(frames_ref, wdft_ref, melfb_t_ref, spec_ref, o_ref):
    """Fused log-mel + |mel - spec| accumulation over a tile of frames.

    frames_ref : (TILE_M, N_FFT_PAD)      raw (unwindowed) frames, zero padded
    wdft_ref   : (N_FFT_PAD, 2*N_FREQ_PAD) hann-folded [real | imag] DFT matrix
    melfb_t_ref: (N_MELS, N_FREQ_PAD)     mel filterbank, transposed
    spec_ref   : (N_MELS, TILE_M)         target spectrogram tile (lane-dense)
    o_ref      : (N_MELS, TILE_M)         running |diff| accumulator (resident)
    """
    i = pl.program_id(0)
    x = frames_ref[...]
    re_im = jnp.dot(x, wdft_ref[...], preferred_element_type=jnp.float32)
    re = re_im[:, :N_FREQ_PAD]
    im = re_im[:, N_FREQ_PAD:]
    mag = jnp.sqrt(re * re + im * im)                       # |STFT| (no eps bias)
    # contract over the freq axis of both -> lane-dense (N_MELS, TILE_M)
    mel = lax.dot_general(melfb_t_ref[...], mag,
                          dimension_numbers=(((1,), (1,)), ((), ())),
                          preferred_element_type=jnp.float32)
    logmel = jnp.log(jnp.maximum(mel, LOG_CLAMP))
    d = jnp.abs(logmel - spec_ref[...])

    @pl.when(i == 0)
    def _():
        o_ref[...] = d

    @pl.when(i != 0)
    def _():
        o_ref[...] = o_ref[...] + d


def _batched_l1_kernel(a_ref, b_ref, w_ref, o_ref):
    # rows = tensors (padded with 0 on both sides -> 0 contribution),
    # w = 1/numel per row so this yields sum_i mean|a_i - b_i|.
    o_ref[0, 0] = jnp.sum(jnp.abs(a_ref[...] - b_ref[...]) * w_ref[...])


def _batched_sq_to_one_kernel(p_ref, w_ref, o_ref):
    # rows padded with 1.0 -> (1-1)^2 = 0 contribution.
    d = p_ref[...] - 1.0
    o_ref[0, 0] = jnp.sum(d * d * w_ref[...])


# --------------------------------- wrappers --------------------------------------
def mel_l1_loss(audio, spectrogram):
    """Fused log-mel-spectrogram + L1(mel, spectrogram). audio [B,T], spec [B,n_mels,F]."""
    B, T = audio.shape
    pad = (N_FFT - HOP) // 2
    audio_p = jnp.pad(audio.astype(jnp.float32), ((0, 0), (pad, pad)), mode="reflect")
    n_frames = 1 + (audio_p.shape[1] - N_FFT) // HOP
    idx = jnp.arange(n_frames)[:, None] * HOP + jnp.arange(N_FFT)[None, :]
    frames = audio_p[:, idx]                                   # (B, F, n_fft), raw

    M = B * n_frames
    num_tiles = -(-M // TILE_M)
    M_pad = num_tiles * TILE_M

    frames2d = frames.reshape(M, N_FFT)
    frames2d = jnp.pad(frames2d, ((0, M_pad - M), (0, N_FFT_PAD - N_FFT)))

    # spectrogram -> lane-dense [n_mels, M_pad]; padded frames produce log(1e-5),
    # so pad the target with the same value -> zero contribution to the L1.
    spec_t = jnp.transpose(spectrogram, (1, 0, 2)).reshape(N_MELS, M).astype(jnp.float32)
    spec_t = jnp.pad(spec_t, ((0, 0), (0, M_pad - M)), constant_values=_LOG_PAD)

    ce = pl.CostEstimate(
        flops=int(2 * M_pad * N_FFT_PAD * 2 * N_FREQ_PAD + 2 * M_pad * N_FREQ_PAD * N_MELS),
        transcendentals=int(M_pad * (N_FREQ_PAD + N_MELS)),
        bytes_accessed=int(4 * (M_pad * N_FFT_PAD + N_FFT_PAD * 2 * N_FREQ_PAD
                                + N_MELS * N_FREQ_PAD + 2 * N_MELS * M_pad)),
    )

    diff_acc = pl.pallas_call(
        _mel_l1_kernel,
        out_shape=jax.ShapeDtypeStruct((N_MELS, TILE_M), jnp.float32),
        grid_spec=pltpu.PrefetchScalarGridSpec(
            num_scalar_prefetch=0,
            grid=(num_tiles,),
            in_specs=[
                pl.BlockSpec((TILE_M, N_FFT_PAD), lambda i: (i, 0)),          # frames tile
                pl.BlockSpec((N_FFT_PAD, 2 * N_FREQ_PAD), lambda i: (0, 0)),  # resident DFT
                pl.BlockSpec((N_MELS, N_FREQ_PAD), lambda i: (0, 0)),         # resident mel FB
                pl.BlockSpec((N_MELS, TILE_M), lambda i: (0, i)),             # spec tile
            ],
            out_specs=pl.BlockSpec((N_MELS, TILE_M), lambda i: (0, 0)),       # accumulator
        ),
        compiler_params=pltpu.CompilerParams(dimension_semantics=("arbitrary",)),
        cost_estimate=ce,
    )(frames2d, W_DFT, MEL_FB_T, spec_t)

    return jnp.sum(diff_acc) / jnp.float32(B * N_MELS * n_frames)


def _pack_rows(tensors, pad_value):
    """Flatten each tensor to a row of a (R, Cpad) matrix (Cpad multiple of 128)."""
    flats = [jnp.ravel(t).astype(jnp.float32) for t in tensors]
    sizes = [int(f.shape[0]) for f in flats]
    cpad = max(128, -(-max(sizes) // 128) * 128)
    mat = jnp.stack(
        [jnp.pad(f, (0, cpad - n), constant_values=pad_value) for f, n in zip(flats, sizes)],
        axis=0)
    w = jnp.asarray([1.0 / n for n in sizes], dtype=jnp.float32).reshape(-1, 1)
    return mat, w


def batched_l1_mean_sum(preds, labels):
    """sum_i mean|preds_i - labels_i| in a single Pallas call."""
    a, w = _pack_rows(preds, 0.0)
    b, _ = _pack_rows(labels, 0.0)
    s = pl.pallas_call(
        _batched_l1_kernel,
        out_shape=jax.ShapeDtypeStruct((1, 1), jnp.float32),
        in_specs=[pl.BlockSpec(memory_space=_VMEM)] * 3,
        out_specs=pl.BlockSpec(memory_space=_SMEM),
    )(a, b, w)
    return s[0, 0]


def batched_mse_to_one_sum(tensors):
    """sum_i mean((t_i - 1)^2) in a single Pallas call."""
    p, w = _pack_rows(tensors, 1.0)
    s = pl.pallas_call(
        _batched_sq_to_one_kernel,
        out_shape=jax.ShapeDtypeStruct((1, 1), jnp.float32),
        in_specs=[pl.BlockSpec(memory_space=_VMEM)] * 2,
        out_specs=pl.BlockSpec(memory_space=_SMEM),
    )(p, w)
    return s[0, 0]


def gen_loss(msd_gt, mpd_gt, msd_pred, mpd_pred, output_audio, spectrogram):
    # mel reconstruction loss (mel front-end fused with the L1 reduction)
    mel_loss = mel_l1_loss(output_audio, spectrogram)

    # adversarial loss: one batched kernel over all discriminator outputs
    adv_tensors = list(msd_pred[-1]) + list(mpd_pred[-1])
    adversarial_loss = batched_mse_to_one_sum(adv_tensors)

    # feature-matching loss: one batched kernel over all feature-map pairs
    fm_preds, fm_labels = [], []
    for pred_lists, gt_lists in ((msd_pred[:-1], msd_gt[:-1]), (mpd_pred[:-1], mpd_gt[:-1])):
        for pred, label in zip(pred_lists, gt_lists):
            for p, l in zip(pred, label):
                fm_preds.append(p)
                fm_labels.append(l)
    feature_loss = batched_l1_mean_sum(fm_preds, fm_labels)

    loss = adversarial_loss + 2.0 * feature_loss + 45.0 * mel_loss
    return {"loss": loss}


# ------------------------------------ main ----------------------------------------
if __name__ == "__main__":
    key = jax.random.PRNGKey(0)
    keys = jax.random.split(key, 40)
    ki = iter(keys)

    B, T = 2, 2048
    output_audio = jax.random.normal(next(ki), (B, T), dtype=jnp.float32) * 0.1
    pad = (N_FFT - HOP) // 2
    n_frames = 1 + (T + 2 * pad - N_FFT) // HOP                # = 128
    spectrogram = jax.random.normal(next(ki), (B, N_MELS, n_frames), dtype=jnp.float32)

    # discriminator pred/gt structure: [feat_list_0, feat_list_1, outputs_list]
    def make_disc(ki):
        feats_a = [jax.random.normal(next(ki), (B, 8, 64), dtype=jnp.float32),
                   jax.random.normal(next(ki), (B, 16, 32), dtype=jnp.float32)]
        feats_b = [jax.random.normal(next(ki), (B, 8, 64), dtype=jnp.float32),
                   jax.random.normal(next(ki), (B, 16, 32), dtype=jnp.float32)]
        outputs = [jax.random.normal(next(ki), (B, 1, 32), dtype=jnp.float32),
                   jax.random.normal(next(ki), (B, 1, 32), dtype=jnp.float32)]
        return [feats_a, feats_b, outputs]

    msd_gt = make_disc(ki)
    msd_pred = make_disc(ki)
    mpd_gt = make_disc(ki)
    mpd_pred = make_disc(ki)

    result = gen_loss(msd_gt, mpd_gt, msd_pred, mpd_pred, output_audio, spectrogram)
    loss = jax.block_until_ready(result["loss"])
    assert jnp.isfinite(loss)
    print("KERNEL_OK")
</pallas_src>

<mosaic_0001>
module attributes {stable_mosaic.version = 11 : i64} {
  func.func @_mel_l1_kernel(%arg0: i32, %arg1: memref<128x128xf32, #tpu.memory_space<vmem>>, %arg2: memref<128x256xf32, #tpu.memory_space<vmem>>, %arg3: memref<16x128xf32, #tpu.memory_space<vmem>>, %arg4: memref<16x128xf32, #tpu.memory_space<vmem>>, %arg5: memref<16x128xf32, #tpu.memory_space<vmem>>) attributes {dimension_semantics = [#tpu.dimension_semantics<arbitrary>], iteration_bounds = array<i64: 2>, scalar_prefetch = 0 : i64, scratch_operands = 0 : i64, tpu.core_type = #tpu.core_type<tc>, window_params = [{transform_indices = @transform_0, window_bounds = array<i64: 128, 128>}, {pipeline_mode = #tpu.pipeline_mode<synchronous>, transform_indices = @transform_1, window_bounds = array<i64: 128, 256>}, {pipeline_mode = #tpu.pipeline_mode<synchronous>, transform_indices = @transform_2, window_bounds = array<i64: 16, 128>}, {transform_indices = @transform_3, window_bounds = array<i64: 16, 128>}, {pipeline_mode = #tpu.pipeline_mode<synchronous>, transform_indices = @transform_4, window_bounds = array<i64: 16, 128>}]} {
    %c0 = arith.constant 0 : index
    %c0_0 = arith.constant 0 : index
    %0 = vector.load %arg1[%c0, %c0_0] : memref<128x128xf32, #tpu.memory_space<vmem>>, vector<128x128xf32>
    %c0_1 = arith.constant 0 : index
    %c0_2 = arith.constant 0 : index
    %1 = vector.load %arg2[%c0_1, %c0_2] : memref<128x256xf32, #tpu.memory_space<vmem>>, vector<128x256xf32>
    %cst = arith.constant dense<0.000000e+00> : vector<128x256xf32>
    %2 = tpu.matmul %0, %1, %cst {dimension_numbers = #tpu.dot_dimension_numbers<[1], [0], [0], [1], [0, 0, 1, 1], [], []>} : vector<128x128xf32>, vector<128x256xf32>, vector<128x256xf32> -> vector<128x256xf32>
    %3 = vector.extract_strided_slice %2 {offsets = [0, 0], sizes = [128, 128], strides = [1, 1]} : vector<128x256xf32> to vector<128x128xf32>
    %4 = vector.extract_strided_slice %2 {offsets = [0, 128], sizes = [128, 128], strides = [1, 1]} : vector<128x256xf32> to vector<128x128xf32>
    %5 = arith.mulf %3, %3 : vector<128x128xf32>
    %6 = arith.mulf %4, %4 : vector<128x128xf32>
    %7 = arith.addf %5, %6 : vector<128x128xf32>
    %8 = math.sqrt %7 : vector<128x128xf32>
    %c0_3 = arith.constant 0 : index
    %c0_4 = arith.constant 0 : index
    %9 = vector.load %arg3[%c0_3, %c0_4] : memref<16x128xf32, #tpu.memory_space<vmem>>, vector<16x128xf32>
    %cst_5 = arith.constant dense<0.000000e+00> : vector<16x128xf32>
    %10 = tpu.matmul %9, %8, %cst_5 {dimension_numbers = #tpu.dot_dimension_numbers<[1], [1], [0], [0], [0, 0, 1, 0], [], []>} : vector<16x128xf32>, vector<128x128xf32>, vector<16x128xf32> -> vector<16x128xf32>
    %cst_6 = arith.constant 9.99999974E-6 : f32
    %11 = vector.broadcast %cst_6 : f32 to vector<16x128xf32>
    %12 = arith.maximumf %10, %11 : vector<16x128xf32>
    %13 = math.log %12 : vector<16x128xf32>
    %c0_7 = arith.constant 0 : index
    %c0_8 = arith.constant 0 : index
    %14 = vector.load %arg4[%c0_7, %c0_8] : memref<16x128xf32, #tpu.memory_space<vmem>>, vector<16x128xf32>
    %15 = arith.subf %13, %14 : vector<16x128xf32>
    %16 = math.absf %15 : vector<16x128xf32>
    %c0_i32 = arith.constant 0 : i32
    %17 = arith.cmpi eq, %arg0, %c0_i32 : i32
    %18 = arith.extui %17 : i1 to i32
    %c0_i32_9 = arith.constant 0 : i32
    %19 = arith.cmpi ne, %18, %c0_i32_9 : i32
    scf.if %19 {
      %c0_12 = arith.constant 0 : index
      %c0_13 = arith.constant 0 : index
      %23 = vector.load %arg5[%c0_12, %c0_13] : memref<16x128xf32, #tpu.memory_space<vmem>>, vector<16x128xf32>
      tpu.vector_store %arg5[%c0_12, %c0_13], %16 {strides = array<i32>} : memref<16x128xf32, #tpu.memory_space<vmem>>, vector<16x128xf32>,
    } else {
    }
    %c0_i32_10 = arith.constant 0 : i32
    %20 = arith.cmpi ne, %arg0, %c0_i32_10 : i32
    %21 = arith.extui %20 : i1 to i32
    %c0_i32_11 = arith.constant 0 : i32
    %22 = arith.cmpi ne, %21, %c0_i32_11 : i32
    scf.if %22 {
      %c0_12 = arith.constant 0 : index
      %c0_13 = arith.constant 0 : index
      %23 = vector.load %arg5[%c0_12, %c0_13] : memref<16x128xf32, #tpu.memory_space<vmem>>, vector<16x128xf32>
      %24 = arith.addf %23, %16 : vector<16x128xf32>
      %c0_14 = arith.constant 0 : index
      %c0_15 = arith.constant 0 : index
      %25 = vector.load %arg5[%c0_14, %c0_15] : memref<16x128xf32, #tpu.memory_space<vmem>>, vector<16x128xf32>
      tpu.vector_store %arg5[%c0_14, %c0_15], %24 {strides = array<i32>} : memref<16x128xf32, #tpu.memory_space<vmem>>, vector<16x128xf32>,
    } else {
    }
    return
  }
  func.func @transform_0(%arg0: i32) -> (i32, i32) {
    %c0_i32 = arith.constant 0 : i32
    %c0_i32_0 = arith.constant 0 : i32
    return %arg0, %c0_i32 : i32, i32
  }
  func.func @transform_1(%arg0: i32) -> (i32, i32) {
    %c0_i32 = arith.constant 0 : i32
    %c0_i32_0 = arith.constant 0 : i32
    %c0_i32_1 = arith.constant 0 : i32
    return %c0_i32, %c0_i32_0 : i32, i32
  }
  func.func @transform_2(%arg0: i32) -> (i32, i32) {
    %c0_i32 = arith.constant 0 : i32
    %c0_i32_0 = arith.constant 0 : i32
    %c0_i32_1 = arith.constant 0 : i32
    return %c0_i32, %c0_i32_0 : i32, i32
  }
  func.func @transform_3(%arg0: i32) -> (i32, i32) {
    %c0_i32 = arith.constant 0 : i32
    %c0_i32_0 = arith.constant 0 : i32
    return %c0_i32, %arg0 : i32, i32
  }
  func.func @transform_4(%arg0: i32) -> (i32, i32) {
    %c0_i32 = arith.constant 0 : i32
    %c0_i32_0 = arith.constant 0 : i32
    %c0_i32_1 = arith.constant 0 : i32
    return %c0_i32, %c0_i32_0 : i32, i32
  }
}

</mosaic_0001>

<bundles_post_ra>
// kernel: tpu_custom_call.1
= control target key start
LH: loop header
LB: loop body
LE: loop exit
PB: predicated region body
PF: predicated region fallthrough
CT: control target
= control target key end

     0   :  { %9 = vsyncpa [#allocation3], 0  ;;  %s1700_s0 = inlined_call_operand.hbm [shape: f32[256,128], index: 0, kind: input, shape index: {}]   ;;  %s1701_s1 = inlined_call_operand.hbm [shape: f32[128,256], index: 1, kind: input, shape index: {}]   ;;  %s1702_s2 = inlined_call_operand.hbm [shape: f32[16,128], index: 2, kind: input, shape index: {}]   ;;  %s1703_s3 = inlined_call_operand.hbm [shape: f32[16,256], index: 3, kind: input, shape index: {}]   ;;  %s1704_s4 = inlined_call_operand.hbm [shape: f32[16,128], index: 4, kind: output, shape index: {}]  }
   0x1   :  { %11 = vsyncpa [#allocation3 + $0x1], 0 }
   0x2   :  { %12 = vsyncpa [#allocation6], 0 }
   0x3   :  { %13 = vsyncpa [#allocation9], 0 }
   0x4   :  { %15 = vsyncpa [#allocation9 + $0x1], 0 }
   0x5   :  { %16 = vsyncpa [#allocation4], 0  ;;  %s1329_s15 = smov 0   ;;  %s1331_s16 = smov 0  }
   0x6   :  { %s1333_s17 = smov 0   ;;  %s1335_s18 = smov 0  }
   0x7 LB: > { %s1348_s19 = sadd.s32 4294967295, %s1290_s18   ;;  %s1351_s20 = sadd.s32 1, %s1290_s18   ;;  %s1290_s18 = sphi %s1335_s18, %s1723_s18   ;;  %s1286_s17 = sphi %s1333_s17, %s1722_s17   ;;  %s1282_s16 = sphi %s1331_s16, %s1721_s16   ;;  %s1278_s15 = sphi %s1329_s15, %s1720_s15  }
   0x8   : > { %s26_s21 = ssub.s32 %s1290_s18, %s1351_s20  ;;  %s29_s22 = sadd.s32 1, %s1286_s17 }
   0x9   : > { %p27_p0 = scmp.eq.s32.totalorder %s26_s21, 0  ;;  %p36_p1 = scmp.ne.s32.totalorder %s1286_s17, %s1282_s16 }
   0xa   : > { %p37_p2 = scmp.eq.s32.totalorder %s1290_s18, 0  ;;  %p42_p3 = scmp.ne.s32.totalorder %s1282_s16, %s1278_s15 }
   0xb   : > { %s1361_s23 = scalar_select %p27_p0, %s1286_s17, %s29_s22  }
   0xc   : > { %p1363_p4 = por %p37_p2, %p36_p1  ;;  %p1705_p5 = scmp.eq.s32.totalorder %s1348_s19, 0 }
   0xd   : > { %p849_p6 = scmp.ge.s32.totalorder %s1290_s18, 1  ;;  %p142_p7 = scmp.lt.s32.totalorder %s1290_s18, 3 }
   0xe   : > { %s1708_s24 = scalar_select %p1363_p4, 1, 0 }
   0xf   : > { %p1372_p8 = por %p1705_p5, %p42_p3  ;;  %p1377_p10 = pnand %p849_p6, %p142_p7 }
  0x10   : > { %s1292_s27 = smov [#allocation5]   ;;  %s1293_s30 = smov [#allocation7]  }
  0x11   : > { %s1709_s25 = scalar_select %p1372_p8, 1, 0 }
  0x12   : > { %s1710_s26 = scalar_select %p1377_p10, 1, 0 }
  0x13   : > { %s154_s28 = sshll.u32 %s1292_s27, 4  ;;  %p1003_p11 = pneg %p1377_p10  ;;  %s155_s28 = int_to_ptr.vmem [resolvable:$true] %s154_s28 }
  0x14   : > { %s167_s5 = sshll.u32 %s1293_s30, 4  ;;  %s1102_s8 = scalar_lea.hbm %s1701_s1, 4096  ;;  %s1389_s5 = int_to_ptr.vmem [resolvable:$true] %s167_s5 }
  0x15   : > { %p1385_p12 = pnand %p1003_p11, %p1705_p5  ;;  %p1103_p13 = scmp.ne.s32.totalorder %s1701_s1, %s1102_s8 }
  0x16   : > { %p1109_p3 = scmp.lt.u32.totalorder %s1102_s8, %s1701_s1 }
  0x17   : > { %p1104_p0 = pneg %p1385_p12 }
  0x19   : > { %p1105_p1 = pnand %p1104_p0, %p1103_p13 }
  0x1b   : > { %p1106_p2 = pneg %p1105_p1 }
  0x1d   : > { %p1111_p6 = pnand %p1109_p3, %p1106_p2 }
  0x1f   : > { %1114 = shalt.err (!%p1111_p6)
}
  0x20   : > { %s1115_s13 = scalar_lea.vmem %s155_s28, 4096  ;;  %p1123_p5 = scmp.lt.s32.totalorder %s155_s28, %s155_s28 }
  0x21   : > { %p1116_p7 = scmp.ne.s32.totalorder %s155_s28, %s1115_s13  ;;  %p1124_p8 = scmp.lt.s32.totalorder %s1115_s13, %s1115_s13 }
  0x23   : > { %p1118_p11 = pnand %p1116_p7, %p1104_p0  ;;  %p1125_p10 = por %p1124_p8, %p1123_p5 }
  0x25   : > { %p1119_p9 = pneg %p1118_p11 }
  0x27   : > { %p1126_p4 = pnand %p1125_p10, %p1119_p9 }
  0x29   : > { %1129 = shalt.err (!%p1126_p4)
}
  0x2a   : > { %s1294_s14 = smov 256   ;;  %s1295_s15 = smov 16  }
  0x2b   : > { %1006 = dma.hbm_to_vmem [thread:$0]  (!%p1385_p12), %s1701_s1, 4096, %s155_s28, [#allocation6], %s1294_s14, %s1294_s14, %s1295_s15  }
  0x2c   : > { %p1019_p13 = scmp.lt.s32.totalorder %s1290_s18, 2  ;;  %s1130_s6 = scalar_lea.hbm %s1702_s2, 256 }
  0x2d   : > { %p1131_p4 = scmp.ne.s32.totalorder %s1702_s2, %s1130_s6  ;;  %p1137_p9 = scmp.lt.u32.totalorder %s1130_s6, %s1702_s2 }
  0x2f   : > { %p1133_p5 = pnand %p1131_p4, %p1104_p0 }
  0x31   : > { %p1134_p8 = pneg %p1133_p5 }
  0x33   : > { %p1139_p10 = pnand %p1137_p9, %p1134_p8 }
  0x35   : > { %1142 = shalt.err (!%p1139_p10)
}
  0x36   : > { %s1143_s28 = scalar_lea.vmem %s1389_s5, 256  ;;  %p1151_p6 = scmp.lt.s32.totalorder %s1389_s5, %s1389_s5 }
  0x37   : > { %p1144_p1 = scmp.ne.s32.totalorder %s1389_s5, %s1143_s28  ;;  %p1152_p7 = scmp.lt.s32.totalorder %s1143_s28, %s1143_s28 }
  0x39   : > { %p1146_p2 = pnand %p1144_p1, %p1104_p0  ;;  %p1153_p11 = por %p1152_p7, %p1151_p6 }
  0x3b   : > { %p1147_p3 = pneg %p1146_p2 }
  0x3d   : > { %p1154_p4 = pnand %p1153_p11, %p1147_p3 }
  0x3f   : > { %1157 = shalt.err (!%p1154_p4)
}
  0x40   : > { %s1296_s11 = smov 128   ;;  %s1297_s12 = smov 8  }
  0x41   : > { %1009 = dma.hbm_to_vmem [thread:$0]  (!%p1385_p12), %s1702_s2, 256, %s1389_s5, [#allocation6], %s1296_s11, %s1296_s11, %s1297_s12  }
  0x42   : > { %s1445_s21 = sand.u32 1, %s1286_s17   ;;  %s869_s22 = sshll.u32 %s1290_s18, 11 }
  0x43   : > { %s853_s27 = sshll.u32 %s1445_s21, 7  ;;  %s1452_s7 = scalar_lea.hbm %s1700_s0, %s869_s22 }
  0x44   : > { %s185_s29 = scalar_lea.vmem [#allocation2], %s853_s27  ;;  %p1712_p0 = scmp.ne.s32.totalorder %s1708_s24, 0 }
  0x45   : > { %s192_s8 = sshll.u32 %s185_s29, 4  ;;  %s856_s9 = sshll.u32 %s1445_s21, 4  ;;  %s1462_s8 = int_to_ptr.vmem [resolvable:$true] %s192_s8 }
  0x46   : > { %p1458_p12 = pnand %p1019_p13, %p1712_p0  ;;  %s182_s10 = scalar_lea.sflag [#allocation3], %s1445_s21 }
  0x47   : > { %s1158_s28 = scalar_lea.hbm %s1452_s7, 2048  ;;  %s1163_s15 = scalar_lea.hbm %s1700_s0, 4096 }
  0x48   : > { %p1159_p5 = scmp.ne.s32.totalorder %s1452_s7, %s1158_s28  ;;  %p1160_p8 = pneg %p1458_p12 }
  0x49   : > { %p1164_p13 = scmp.lt.u32.totalorder %s1452_s7, %s1700_s0  ;;  %p1165_p1 = scmp.lt.u32.totalorder %s1163_s15, %s1158_s28 }
  0x4a   : > { %p1161_p9 = pnand %p1160_p8, %p1159_p5  ;;  %p1167_p3 = scmp.lt.u32.totalorder %s1158_s28, %s1452_s7 }
  0x4b   : > { %p1166_p2 = por %p1165_p1, %p1164_p13 }
  0x4c   : > { %p1162_p10 = pneg %p1161_p9 }
  0x4d   : > { %p1168_p6 = por %p1167_p3, %p1166_p2 }
  0x4f   : > { %p1169_p7 = pnand %p1168_p6, %p1162_p10 }
  0x51   : > { %1172 = shalt.err (!%p1169_p7)
}
  0x52   : > { %s1173_s30 = scalar_lea.vmem %s1462_s8, 2048  ;;  %s1298_s6 = smov [#allocation2]  }
  0x53   : > { %p1174_p11 = scmp.ne.s32.totalorder %s1462_s8, %s1173_s30  ;;  %s1178_s29 = sshll.u32 %s1298_s6, 4  ;;  %s1179_s29 = int_to_ptr.vmem [resolvable:$false] %s1178_s29 }
  0x54   : > { %s1180_s24 = scalar_lea.vmem %s1179_s29, 4096  ;;  %p1181_p5 = scmp.lt.s32.totalorder %s1462_s8, %s1179_s29 }
  0x55   : > { %p1176_p4 = pnand %p1174_p11, %p1160_p8  ;;  %p1182_p9 = scmp.lt.s32.totalorder %s1180_s24, %s1173_s30 }
  0x57   : > { %p1177_p0 = pneg %p1176_p4  ;;  %p1183_p13 = por %p1182_p9, %p1181_p5 }
  0x59   : > { %p1184_p1 = pnand %p1183_p13, %p1177_p0 }
  0x5b   : > { %1187 = shalt.err (!%p1184_p1)
}
  0x5c   : > { %1013 = dma.hbm_to_vmem [thread:$0]  (!%p1458_p12), %s1452_s7, 2048, %s1462_s8, %s182_s10, %s1296_s11, %s1296_s11, %s1297_s12  }
  0x5d   : > { %s857_s28 = sshll.u32 %s1290_s18, 7  ;;  %s206_s27 = scalar_lea.vmem [#allocation8], %s856_s9 }
  0x5e   : > { %s1500_s22 = scalar_lea.hbm %s1703_s3, %s857_s28  ;;  %s212_s30 = sshll.u32 %s206_s27, 4  ;;  %s1504_s30 = int_to_ptr.vmem [resolvable:$true] %s212_s30 }
  0x5f   : > { %s203_s6 = scalar_lea.sflag [#allocation9], %s1445_s21  ;;  %s1188_s29 = scalar_lea.hbm %s1500_s22, 256 }
  0x60   : > { %p1189_p10 = scmp.ne.s32.totalorder %s1500_s22, %s1188_s29  ;;  %s1193_s8 = scalar_lea.hbm %s1703_s3, 512 }
  0x61   : > { %p1194_p6 = scmp.lt.u32.totalorder %s1500_s22, %s1703_s3  ;;  %p1195_p7 = scmp.lt.u32.totalorder %s1193_s8, %s1188_s29 }
  0x62   : > { %p1191_p2 = pnand %p1189_p10, %p1160_p8  ;;  %p1197_p4 = scmp.lt.u32.totalorder %s1188_s29, %s1500_s22 }
  0x63   : > { %p1196_p11 = por %p1195_p7, %p1194_p6 }
  0x64   : > { %p1192_p3 = pneg %p1191_p2 }
  0x65   : > { %p1198_p0 = por %p1197_p4, %p1196_p11 }
  0x67   : > { %p1199_p5 = pnand %p1198_p0, %p1192_p3 }
  0x69   : > { %1202 = shalt.err (!%p1199_p5)
}
  0x6a   : > { %s1203_s9 = scalar_lea.vmem %s1504_s30, 256  ;;  %s1299_s28 = smov [#allocation8]  }
  0x6b   : > { %p1204_p9 = scmp.ne.s32.totalorder %s1504_s30, %s1203_s9  ;;  %s1208_s13 = sshll.u32 %s1299_s28, 4  ;;  %s1209_s13 = int_to_ptr.vmem [resolvable:$false] %s1208_s13 }
  0x6c   : > { %s1210_s15 = scalar_lea.vmem %s1209_s13, 512  ;;  %p1211_p10 = scmp.lt.s32.totalorder %s1504_s30, %s1209_s13 }
  0x6d   : > { %p1206_p13 = pnand %p1204_p9, %p1160_p8  ;;  %p1212_p2 = scmp.lt.s32.totalorder %s1210_s15, %s1203_s9 }
  0x6f   : > { %p1207_p1 = pneg %p1206_p13  ;;  %p1213_p6 = por %p1212_p2, %p1211_p10 }
  0x71   : > { %p1214_p7 = pnand %p1213_p6, %p1207_p1 }
  0x73   : > { %1217 = shalt.err (!%p1214_p7)
}
  0x74   : > { %1016 = dma.hbm_to_vmem [thread:$0]  (!%p1458_p12), %s1500_s22, 256, %s1504_s30, %s203_s6, %s1294_s14, %s1296_s11, %s1297_s12  }
  0x75   : > { %p1714_p8 = scmp.ne.s32.totalorder %s1710_s26, 0 }
  0x76   : > { %s226_s27 = sand.u32 (!%p1714_p8), 1, %s1282_s16   ;;  %p1715_p3 = scmp.ne.s32.totalorder (!%p1714_p8), %s1709_s25, 0 }
  0x77   : > { %224 = sbr.rel (%p1714_p8) target bundleno = 740 (0x2e4), region = 36  ;;  %s859_s29 = sshll.u32 (!%p1714_p8), %s226_s27, 7 }
  0x78   : > { %s227_s18 = scalar_lea.sflag (!%p1714_p8), [#allocation3], %s226_s27  ;;  %s1538_s7 = scalar_lea.vmem (!%p1714_p8), [#allocation2], %s859_s29 }
  0x7e   : > { %1261 = dma.done.wait (%p1715_p3), %s227_s18, 2048  }
  0x7f   : > { %1263 = vsyncadd (%p1715_p3), %s227_s18, 4294965248  ;;  %p1716_p11 = scmp.eq.s32.totalorder %s1348_s19, 0 }
  0x81   : > { %1265 = dma.done.wait (%p1716_p11), [#allocation6], 4352   ;;  %p1717_p12 = pmov %p1716_p11 }
  0x82   : > { %s862_s26 = sshll.u32 %s226_s27, 4  ;;  %s244_s14 = scalar_lea.sflag [#allocation9], %s226_s27 }
  0x83   : > { %1267 = vsyncadd (%p1717_p12), [#allocation6], 4294962944  ;;  %s1548_s11 = scalar_lea.vmem [#allocation8], %s862_s26 }
  0x84   : > { %1269 = dma.done.wait (%p1715_p3), %s244_s14, 256  }
  0x85   : > { %1271 = vsyncadd (%p1715_p3), %s244_s14, 4294967040  ;;  %v1300_v0 = vmov 0.0   ;;  %v290_v1 = vld [vmem:[#allocation5 + $0x8] sm:$0xff]  ;;  %v292_v2 = vld [vmem:[#allocation5 + $0x18] sm:$0xff]  ;;  %p1718_p4 = scmp.ne.s32.totalorder %s1348_s19, 0 }
  0x86   : > { %385 = vmatprep.mubr.f32.mxu0 %v1300_v0  ;;  %v289_v3 = vld [vmem:[#allocation5] sm:$0xff]  ;;  %v923_v4 = vpack.c.bf16 %v292_v2, %v290_v1  ;;  %v291_v5 = vld [vmem:[#allocation5 + $0x10] sm:$0xff]  ;;  %v294_v6 = vld [vmem:[#allocation5 + $0x28] sm:$0xff] }
  0x87   : > { %v296_v7 = vld [vmem:[#allocation5 + $0x38] sm:$0xff]  ;;  %v925_v8 = vpack.c.bf16 %v291_v5, %v289_v3  ;;  %v293_v10 = vld [vmem:[#allocation5 + $0x20] sm:$0xff]  ;;  %v295_v11 = vld [vmem:[#allocation5 + $0x30] sm:$0xff] }
  0x88   : > { %v927_v9 = vpack.c.bf16 %v296_v7, %v294_v6  ;;  %v298_v12 = vld [vmem:[#allocation5 + $0x48] sm:$0xff]  ;;  %924 = vmatprep.subr.bf16.mxu0 %v923_v4  ;;  %v300_v13 = vld [vmem:[#allocation5 + $0x58] sm:$0xff]  ;;  %v929_v14 = vpack.c.bf16 %v295_v11, %v293_v10  ;;  %v297_v16 = vld [vmem:[#allocation5 + $0x40] sm:$0xff] }
  0x89   : > { %926 = vmatpush1.bf16.msra.mxu0 %v925_v8  ;;  %v931_v15 = vpack.c.bf16 %v300_v13, %v298_v12  ;;  %v299_v17 = vld [vmem:[#allocation5 + $0x50] sm:$0xff]  ;;  %v302_v18 = vld [vmem:[#allocation5 + $0x68] sm:$0xff]  ;;  %v304_v19 = vld [vmem:[#allocation5 + $0x78] sm:$0xff] }
  0x8a   : > { %928 = vmatprep.subr.bf16.mxu0 %v927_v9  ;;  %v933_v20 = vpack.c.bf16 %v299_v17, %v297_v16  ;;  %v935_v21 = vpack.c.bf16 %v304_v19, %v302_v18  ;;  %v301_v22 = vld [vmem:[#allocation5 + $0x60] sm:$0xff]  ;;  %v303_v23 = vld [vmem:[#allocation5 + $0x70] sm:$0xff]  ;;  %v306_v24 = vld [vmem:[#allocation5 + $0x88] sm:$0xff] }
  0x8b   : > { %v308_v25 = vld [vmem:[#allocation5 + $0x98] sm:$0xff]  ;;  %v937_v26 = vpack.c.bf16 %v303_v23, %v301_v22  ;;  %v305_v28 = vld [vmem:[#allocation5 + $0x80] sm:$0xff]  ;;  %v307_v29 = vld [vmem:[#allocation5 + $0x90] sm:$0xff] }
  0x8c   : > { %v939_v27 = vpack.c.bf16 %v308_v25, %v306_v24  ;;  %v310_v30 = vld [vmem:[#allocation5 + $0xa8] sm:$0xff]  ;;  %v312_v31 = vld [vmem:[#allocation5 + $0xb8] sm:$0xff]  ;;  %v941_v32 = vpack.c.bf16 %v307_v29, %v305_v28  ;;  %v309_v34 = vld [vmem:[#allocation5 + $0xa0] sm:$0xff] }
  0x8d   : > { %930 = vmatpush1.bf16.msra.mxu0 %v929_v14  ;;  %v943_v33 = vpack.c.bf16 %v312_v31, %v310_v30  ;;  %v311_v35 = vld [vmem:[#allocation5 + $0xb0] sm:$0xff]  ;;  %v314_v36 = vld [vmem:[#allocation5 + $0xc8] sm:$0xff]  ;;  %v316_v37 = vld [vmem:[#allocation5 + $0xd8] sm:$0xff] }
  0x8e   : > { %932 = vmatprep.subr.bf16.mxu0 %v931_v15  ;;  %v945_v38 = vpack.c.bf16 %v311_v35, %v309_v34  ;;  %v947_v39 = vpack.c.bf16 %v316_v37, %v314_v36  ;;  %v313_v40 = vld [vmem:[#allocation5 + $0xc0] sm:$0xff]  ;;  %v315_v41 = vld [vmem:[#allocation5 + $0xd0] sm:$0xff]  ;;  %v318_v42 = vld [vmem:[#allocation5 + $0xe8] sm:$0xff] }
  0x8f   : > { %v320_v43 = vld [vmem:[#allocation5 + $0xf8] sm:$0xff]  ;;  %v949_v44 = vpack.c.bf16 %v315_v41, %v313_v40  ;;  %v317_v46 = vld [vmem:[#allocation5 + $0xe0] sm:$0xff]  ;;  %v319_v47 = vld [vmem:[#allocation5 + $0xf0] sm:$0xff] }
  0x90   : > { %v951_v45 = vpack.c.bf16 %v320_v43, %v318_v42  ;;  %v953_v48 = vpack.c.bf16 %v319_v47, %v317_v46  ;;  %v273_v49 = vld [vmem:[%s1538_s7] sm:$0xff]  ;;  %v274_v50 = vld [vmem:[%s1538_s7 + $0x8] sm:$0xff]  ;;  %v275_v51 = vld [vmem:[%s1538_s7 + $0x10] sm:$0xff] }
  0x91   : > { %934 = vmatpush1.bf16.msra.mxu0 %v933_v20  ;;  %v276_v52 = vld [vmem:[%s1538_s7 + $0x18] sm:$0xff]  ;;  %v277_v53 = vld [vmem:[%s1538_s7 + $0x20] sm:$0xff]  ;;  %v278_v54 = vld [vmem:[%s1538_s7 + $0x28] sm:$0xff] }
  0x92   : > { %936 = vmatprep.subr.bf16.mxu0 %v935_v21  ;;  %v279_v55 = vld [vmem:[%s1538_s7 + $0x30] sm:$0xff]  ;;  %v280_v56 = vld [vmem:[%s1538_s7 + $0x38] sm:$0xff]  ;;  %v281_v57 = vld [vmem:[%s1538_s7 + $0x40] sm:$0xff] }
  0x93   : > { %v282_v58 = vld [vmem:[%s1538_s7 + $0x48] sm:$0xff]  ;;  %v283_v59 = vld [vmem:[%s1538_s7 + $0x50] sm:$0xff]  ;;  %v284_v60 = vld [vmem:[%s1538_s7 + $0x58] sm:$0xff] }
  0x94   : > { %v285_v61 = vld [vmem:[%s1538_s7 + $0x60] sm:$0xff]  ;;  %v286_v62 = vld [vmem:[%s1538_s7 + $0x68] sm:$0xff]  ;;  %v287_v63 = vld [vmem:[%s1538_s7 + $0x70] sm:$0xff] }
  0x95   : > { %938 = vmatpush1.bf16.msra.mxu0 %v937_v26  ;;  %v288_v1 = vld [vmem:[%s1538_s7 + $0x78] sm:$0xff]  ;;  %v642_v2 = vld [vmem:[#allocation7] sm:$0xff] }
  0x96   : > { %940 = vmatprep.subr.bf16.mxu0 %v939_v27  ;;  %920 = vmatprep.mubr.f32.mxu1 %v642_v2 }
  0x99   : > { %942 = vmatpush1.bf16.msra.mxu0 %v941_v32 }
  0x9a   : > { %944 = vmatprep.subr.bf16.mxu0 %v943_v33 }
  0x9d   : > { %946 = vmatpush1.bf16.msra.mxu0 %v945_v38 }
  0x9e   : > { %948 = vmatprep.subr.bf16.mxu0 %v947_v39 }
  0xa1   : > { %950 = vmatpush1.bf16.msra.mxu0 %v949_v44 }
  0xa2   : > { %952 = vmatprep.subr.bf16.mxu0 %v951_v45 }
  0xa5   : > { %954 = vmatpush1.bf16.msra.mxu0 %v953_v48 }
  0xa8   : > { %386 = vmatmul.mubr.f32.vlgmr.msra.gmra.mrb[0].mxu0 %v273_v49 }
  0xa9   : > { %391 = vmatprep.mubr.f32.mxu0 %v1300_v0 }
  0xac   : > { %392 = vmatmul.mubr.f32.gmra.mrb[2].mxu0 %v274_v50 }
  0xad   : > { %397 = vmatprep.mubr.f32.mxu0 %v1300_v0 }
  0xb0   : > { %398 = vmatmul.mubr.f32.gmra.mrb[4].mxu0 %v275_v51 }
  0xb1   : > { %403 = vmatprep.mubr.f32.mxu0 %v1300_v0 }
  0xb4   : > { %404 = vmatmul.mubr.f32.gmra.mrb[6].mxu0 %v276_v52 }
  0xb5   : > { %409 = vmatprep.mubr.f32.mxu0 %v1300_v0 }
  0xb8   : > { %410 = vmatmul.mubr.f32.gmra.mrb[8].mxu0 %v277_v53 }
  0xb9   : > { %415 = vmatprep.mubr.f32.mxu0 %v1300_v0 }
  0xbc   : > { %416 = vmatmul.mubr.f32.gmra.mrb[10].mxu0 %v278_v54 }
  0xbd   : > { %421 = vmatprep.mubr.f32.mxu0 %v1300_v0 }
  0xc0   : > { %422 = vmatmul.mubr.f32.gmra.mrb[12].mxu0 %v279_v55 }
  0xc1   : > { %427 = vmatprep.mubr.f32.mxu0 %v1300_v0 }
  0xc4   : > { %428 = vmatmul.mubr.f32.gmra.mrb[14].mxu0 %v280_v56 }
  0xc5   : > { %433 = vmatprep.mubr.f32.mxu0 %v1300_v0 }
  0xc8   : > { %434 = vmatmul.mubr.f32.gmra.mrb[16].mxu0 %v281_v57 }
  0xc9   : > { %439 = vmatprep.mubr.f32.mxu0 %v1300_v0 }
  0xcc   : > { %440 = vmatmul.mubr.f32.gmra.mrb[18].mxu0 %v282_v58 }
  0xcd   : > { %445 = vmatprep.mubr.f32.mxu0 %v1300_v0 }
  0xd0   : > { %446 = vmatmul.mubr.f32.gmra.mrb[20].mxu0 %v283_v59 }
  0xd1   : > { %451 = vmatprep.mubr.f32.mxu0 %v1300_v0 }
  0xd4   : > { %452 = vmatmul.mubr.f32.gmra.mrb[22].mxu0 %v284_v60 }
  0xd5   : > { %457 = vmatprep.mubr.f32.mxu0 %v1300_v0 }
  0xd8   : > { %458 = vmatmul.mubr.f32.gmra.mrb[24].mxu0 %v285_v61 }
  0xd9   : > { %463 = vmatprep.mubr.f32.mxu0 %v1300_v0 }
  0xdc   : > { %464 = vmatmul.mubr.f32.gmra.mrb[26].mxu0 %v286_v62 }
  0xdd   : > { %469 = vmatprep.mubr.f32.mxu0 %v1300_v0 }
  0xe0   : > { %470 = vmatmul.mubr.f32.gmra.mrb[28].mxu0 %v287_v63 }
  0xe1   : > { %475 = vmatprep.mubr.f32.mxu0 %v1300_v0 }
  0xe4   : > { %476 = vmatmul.mubr.f32.gmra.mrb[30].mxu0 %v288_v1 }
 0x17b   : > { %v387_v3 = vpop.f32.mrb[0].mxu0 }
 0x17c   : > { %v482_v4 = vmul.f32 %v387_v3, %v387_v3  ;;  %v389_v5 = vpop.f32.mrb[1].mxu0 }
 0x17d   : > { %v498_v6 = vmul.f32 %v389_v5, %v389_v5 }
 0x17f   : > { %v514_v7 = vadd.f32 %v498_v6, %v482_v4  ;;  %v393_v8 = vpop.f32.mrb[2].mxu0 }
 0x180   : > { %v483_v9 = vmul.f32 %v393_v8, %v393_v8  ;;  %v395_v10 = vpop.f32.mrb[3].mxu0 }
 0x181   : > { %v499_v11 = vmul.f32 %v395_v10, %v395_v10  ;;  %1066 = vrsqrt.f32 %v514_v7  ;;  %vm532_vm0 = vcmp.eq.f32.partialorder %v514_v7, inf  ;;  %v535_v34 = vand.u32 2147483648, %v514_v7 }
 0x182   : > { %vm534_vm2 = vcmp.eq.f32.partialorder %v514_v7, 0.0 }
 0x183   : > { %v515_v12 = vadd.f32 %v499_v11, %v483_v9  ;;  %v399_v13 = vpop.f32.mrb[4].mxu0 }
 0x184   : > { %v484_v14 = vmul.f32 %v399_v13, %v399_v13  ;;  %v401_v15 = vpop.f32.mrb[5].mxu0 }
 0x185   : > { %v500_v16 = vmul.f32 %v401_v15, %v401_v15  ;;  %1068 = vrsqrt.f32 %v515_v12  ;;  %vm539_vm1 = vcmp.eq.f32.partialorder %v515_v12, inf  ;;  %v542_v37 = vand.u32 2147483648, %v515_v12 }
 0x186   : > { %vm541_vm3 = vcmp.eq.f32.partialorder %v515_v12, 0.0 }
 0x187   : > { %v1586_v0 = vadd.f32 %v500_v16, %v484_v14  ;;  %v405_v17 = vpop.f32.mrb[6].mxu0 }
 0x188   : > { %v485_v18 = vmul.f32 %v405_v17, %v405_v17  ;;  %v407_v19 = vpop.f32.mrb[7].mxu0 }
 0x189   : > { %1070 = vrsqrt.f32 %v1586_v0  ;;  %v501_v20 = vmul.f32 %v407_v19, %v407_v19  ;;  %vm546_vm4 = vcmp.eq.f32.partialorder %v1586_v0, inf  ;;  %v549_v55 = vand.u32 2147483648, %v1586_v0 }
 0x18a   : > { %vm548_vm6 = vcmp.eq.f32.partialorder %v1586_v0, 0.0 }
 0x18b   : > { %v1067_v21 = vpop.eup %1066  ;;  %v517_v22 = vadd.f32 %v501_v20, %v485_v18  ;;  %v411_v23 = vpop.f32.mrb[8].mxu0 }
 0x18c   : > { %v486_v24 = vmul.f32 %v411_v23, %v411_v23  ;;  %v413_v25 = vpop.f32.mrb[9].mxu0  ;;  %v531_v26 = vmul.f32 %v1067_v21, %v514_v7 }
 0x18d   : > { %1072 = vrsqrt.f32 %v517_v22  ;;  %v502_v27 = vmul.f32 %v413_v25, %v413_v25  ;;  %vm553_vm5 = vcmp.eq.f32.partialorder %v517_v22, inf  ;;  %v556_v58 = vand.u32 2147483648, %v517_v22 }
 0x18e   : > { %v533_v33 = vsel %vm532_vm0, %v514_v7, %v531_v26  ;;  %vm555_vm7 = vcmp.eq.f32.partialorder %v517_v22, 0.0 }
 0x18f   : > { %v1069_v28 = vpop.eup %1068  ;;  %v1589_v29 = vadd.f32 %v502_v27, %v486_v24  ;;  %v417_v30 = vpop.f32.mrb[10].mxu0  ;;  %v536_v42 = vsel %vm534_vm2, %v535_v34, %v533_v33 }
 0x190   : > { %v487_v31 = vmul.f32 %v417_v30, %v417_v30  ;;  %v419_v32 = vpop.f32.mrb[11].mxu0  ;;  %v538_v35 = vmul.f32 %v1069_v28, %v515_v12 }
 0x191   : > { %1074 = vrsqrt.f32 %v1589_v29  ;;  %v503_v36 = vmul.f32 %v419_v32, %v419_v32  ;;  %vm560_vm8 = vcmp.eq.f32.partialorder %v1589_v29, inf  ;;  %v563_v13 = vand.u32 2147483648, %v1589_v29 }
 0x192   : > { %v540_v38 = vsel %vm539_vm1, %v515_v12, %v538_v35  ;;  %vm562_vm10 = vcmp.eq.f32.partialorder %v1589_v29, 0.0 }
 0x193   : > { %v1071_v39 = vpop.eup %1070  ;;  %v1592_v40 = vadd.f32 %v503_v36, %v487_v31  ;;  %v423_v41 = vpop.f32.mrb[12].mxu0  ;;  %v543_v43 = vsel %vm541_vm3, %v542_v37, %v540_v38 }
 0x194   : > { %v488_v44 = vmul.f32 %v423_v41, %v423_v41  ;;  %v425_v45 = vpop.f32.mrb[13].mxu0  ;;  %v955_v46 = vpack.c.bf16 %v543_v43, %v536_v42  ;;  %v545_v47 = vmul.f32 %v1071_v39, %v1586_v0 }
 0x195   : > { %1076 = vrsqrt.f32 %v1592_v40  ;;  %v504_v48 = vmul.f32 %v425_v45, %v425_v45  ;;  %vm567_vm9 = vcmp.eq.f32.partialorder %v1592_v40, inf  ;;  %v570_v16 = vand.u32 2147483648, %v1592_v40 }
 0x196   : > { %956 = vmatprep.subr.bf16.mxu1 %v955_v46  ;;  %v547_v54 = vsel %vm546_vm4, %v1586_v0, %v545_v47  ;;  %vm569_vm11 = vcmp.eq.f32.partialorder %v1592_v40, 0.0 }
 0x197   : > { %v1073_v49 = vpop.eup %1072  ;;  %v1596_v50 = vadd.f32 %v504_v48, %v488_v44  ;;  %v429_v51 = vpop.f32.mrb[14].mxu0  ;;  %958 = vmatpush3.bf16.xpose.msra.mxu1 %v955_v46  ;;  %v550_v63 = vsel %vm548_vm6, %v549_v55, %v547_v54 }
 0x198   : > { %v489_v52 = vmul.f32 %v429_v51, %v429_v51  ;;  %v431_v53 = vpop.f32.mrb[15].mxu0  ;;  %v552_v56 = vmul.f32 %v1073_v49, %v517_v22 }
 0x199   : > { %1078 = vrsqrt.f32 %v1596_v50  ;;  %v505_v57 = vmul.f32 %v431_v53, %v431_v53  ;;  %vm574_vm12 = vcmp.eq.f32.partialorder %v1596_v50, inf  ;;  %v577_v33 = vand.u32 2147483648, %v1596_v50 }
 0x19a   : > { %v554_v59 = vsel %vm553_vm5, %v517_v22, %v552_v56  ;;  %vm576_vm14 = vcmp.eq.f32.partialorder %v1596_v50, 0.0 }
 0x19b   : > { %v1075_v60 = vpop.eup %1074  ;;  %v1603_v61 = vadd.f32 %v505_v57, %v489_v52  ;;  %v435_v62 = vpop.f32.mrb[16].mxu0  ;;  %v557_v1 = vsel %vm555_vm7, %v556_v58, %v554_v59 }
 0x19c   : > { %v490_v2 = vmul.f32 %v435_v62, %v435_v62  ;;  %v437_v3 = vpop.f32.mrb[17].mxu0  ;;  %v959_v4 = vpack.c.bf16 %v557_v1, %v550_v63  ;;  %v559_v5 = vmul.f32 %v1075_v60, %v1589_v29 }
 0x19d   : > { %1080 = vrsqrt.f32 %v1603_v61  ;;  %v506_v6 = vmul.f32 %v437_v3, %v437_v3  ;;  %vm581_vm13 = vcmp.eq.f32.partialorder %v1603_v61, inf  ;;  %v584_v36 = vand.u32 2147483648, %v1603_v61 }
 0x19e   : > { %960 = vmatprep.subr.bf16.mxu1 %v959_v4  ;;  %v561_v12 = vsel %vm560_vm8, %v1589_v29, %v559_v5  ;;  %vm583_vm15 = vcmp.eq.f32.partialorder %v1603_v61, 0.0 }
 0x19f   : > { %v1077_v7 = vpop.eup %1076  ;;  %v1607_v8 = vadd.f32 %v506_v6, %v490_v2  ;;  %v441_v9 = vpop.f32.mrb[18].mxu0  ;;  %962 = vmatpush3.bf16.xpose.msra.mxu1 %v959_v4  ;;  %v564_v20 = vsel %vm562_vm10, %v563_v13, %v561_v12 }
 0x1a0   : > { %v491_v10 = vmul.f32 %v441_v9, %v441_v9  ;;  %v443_v11 = vpop.f32.mrb[19].mxu0  ;;  %v566_v14 = vmul.f32 %v1077_v7, %v1592_v40 }
 0x1a1   : > { %1082 = vrsqrt.f32 %v1607_v8  ;;  %v507_v15 = vmul.f32 %v443_v11, %v443_v11  ;;  %vm588_vm0 = vcmp.eq.f32.partialorder %v1607_v8, inf  ;;  %v591_v54 = vand.u32 2147483648, %v1607_v8 }
 0x1a2   : > { %v568_v0 = vsel %vm567_vm9, %v1592_v40, %v566_v14  ;;  %vm590_vm2 = vcmp.eq.f32.partialorder %v1607_v8, 0.0 }
 0x1a3   : > { %v1079_v17 = vpop.eup %1078  ;;  %v1619_v18 = vadd.f32 %v507_v15, %v491_v10  ;;  %v447_v19 = vpop.f32.mrb[20].mxu0  ;;  %v571_v21 = vsel %vm569_vm11, %v570_v16, %v568_v0 }
 0x1a4   : > { %v492_v22 = vmul.f32 %v447_v19, %v447_v19  ;;  %v449_v23 = vpop.f32.mrb[21].mxu0  ;;  %v963_v24 = vpack.c.bf16 %v571_v21, %v564_v20  ;;  %v573_v25 = vmul.f32 %v1079_v17, %v1596_v50 }
 0x1a5   : > { %1084 = vrsqrt.f32 %v1619_v18  ;;  %v508_v26 = vmul.f32 %v449_v23, %v449_v23  ;;  %vm595_vm1 = vcmp.eq.f32.partialorder %v1619_v18, inf  ;;  %v598_v57 = vand.u32 2147483648, %v1619_v18 }
 0x1a6   : > { %964 = vmatprep.subr.bf16.mxu1 %v963_v24  ;;  %v575_v32 = vsel %vm574_vm12, %v1596_v50, %v573_v25  ;;  %vm597_vm3 = vcmp.eq.f32.partialorder %v1619_v18, 0.0 }
 0x1a7   : > { %v1081_v27 = vpop.eup %1080  ;;  %v1623_v28 = vadd.f32 %v508_v26, %v492_v22  ;;  %v453_v29 = vpop.f32.mrb[22].mxu0  ;;  %966 = vmatpush3.bf16.xpose.msra.mxu1 %v963_v24  ;;  %v578_v41 = vsel %vm576_vm14, %v577_v33, %v575_v32 }
 0x1a8   : > { %v493_v30 = vmul.f32 %v453_v29, %v453_v29  ;;  %v455_v31 = vpop.f32.mrb[23].mxu0  ;;  %v580_v34 = vmul.f32 %v1081_v27, %v1603_v61 }
 0x1a9   : > { %1086 = vrsqrt.f32 %v1623_v28  ;;  %v509_v35 = vmul.f32 %v455_v31, %v455_v31  ;;  %vm602_vm4 = vcmp.eq.f32.partialorder %v1623_v28, inf  ;;  %v605_v12 = vand.u32 2147483648, %v1623_v28 }
 0x1aa   : > { %v582_v37 = vsel %vm581_vm13, %v1603_v61, %v580_v34  ;;  %vm604_vm6 = vcmp.eq.f32.partialorder %v1623_v28, 0.0 }
 0x1ab   : > { %v1083_v38 = vpop.eup %1082  ;;  %v525_v39 = vadd.f32 %v509_v35, %v493_v30  ;;  %v459_v40 = vpop.f32.mrb[24].mxu0  ;;  %v585_v42 = vsel %vm583_vm15, %v584_v36, %v582_v37 }
 0x1ac   : > { %v494_v43 = vmul.f32 %v459_v40, %v459_v40  ;;  %v461_v44 = vpop.f32.mrb[25].mxu0  ;;  %v967_v45 = vpack.c.bf16 %v585_v42, %v578_v41  ;;  %v587_v46 = vmul.f32 %v1083_v38, %v1607_v8  ;;  %v643_v42 = vld [vmem:[#allocation7 + $0x8] sm:$0xff] }
 0x1ad   : > { %1088 = vrsqrt.f32 %v525_v39  ;;  %v510_v47 = vmul.f32 %v461_v44, %v461_v44  ;;  %vm609_vm5 = vcmp.eq.f32.partialorder %v525_v39, inf  ;;  %v612_v15 = vand.u32 2147483648, %v525_v39 }
 0x1ae   : > { %968 = vmatprep.subr.bf16.mxu1 %v967_v45  ;;  %v589_v53 = vsel %vm588_vm0, %v1607_v8, %v587_v46  ;;  %vm611_vm7 = vcmp.eq.f32.partialorder %v525_v39, 0.0 }
 0x1af   : > { %v1085_v48 = vpop.eup %1084  ;;  %v1636_v49 = vadd.f32 %v510_v47, %v494_v43  ;;  %v465_v50 = vpop.f32.mrb[26].mxu0  ;;  %970 = vmatpush3.bf16.xpose.msra.mxu1 %v967_v45  ;;  %v592_v62 = vsel %vm590_vm2, %v591_v54, %v589_v53 }
 0x1b0   : > { %v495_v51 = vmul.f32 %v465_v50, %v465_v50  ;;  %v467_v52 = vpop.f32.mrb[27].mxu0  ;;  %v594_v55 = vmul.f32 %v1085_v48, %v1619_v18  ;;  %v726_v48 = vld [vmem:[%s1548_s11 + $0x8] sm:$0xff] }
 0x1b1   : > { %1090 = vrsqrt.f32 %v1636_v49  ;;  %v511_v56 = vmul.f32 %v467_v52, %v467_v52  ;;  %vm616_vm8 = vcmp.eq.f32.partialorder %v1636_v49, inf  ;;  %v619_v25 = vand.u32 2147483648, %v1636_v49 }
 0x1b2   : > { %v596_v58 = vsel %vm595_vm1, %v1619_v18, %v594_v55  ;;  %vm618_vm10 = vcmp.eq.f32.partialorder %v1636_v49, 0.0 }
 0x1b3   : > { %v1087_v59 = vpop.eup %1086  ;;  %v527_v60 = vadd.f32 %v511_v56, %v495_v51  ;;  %v471_v61 = vpop.f32.mrb[28].mxu0  ;;  %v599_v63 = vsel %vm597_vm3, %v598_v57, %v596_v58  ;;  %v725_v51 = vld [vmem:[%s1548_s11] sm:$0xff] }
 0x1b4   : > { %v496_v1 = vmul.f32 %v471_v61, %v471_v61  ;;  %v473_v2 = vpop.f32.mrb[29].mxu0  ;;  %v971_v3 = vpack.c.bf16 %v599_v63, %v592_v62  ;;  %v601_v4 = vmul.f32 %v1087_v59, %v1623_v28 }
 0x1b5   : > { %1092 = vrsqrt.f32 %v527_v60  ;;  %v512_v5 = vmul.f32 %v473_v2, %v473_v2  ;;  %vm623_vm9 = vcmp.eq.f32.partialorder %v527_v60, inf  ;;  %v626_v26 = vand.u32 2147483648, %v527_v60 }
 0x1b6   : > { %972 = vmatprep.subr.bf16.mxu1 %v971_v3  ;;  %v603_v11 = vsel %vm602_vm4, %v1623_v28, %v601_v4  ;;  %vm625_vm11 = vcmp.eq.f32.partialorder %v527_v60, 0.0 }
 0x1b7   : > { %v1089_v6 = vpop.eup %1088  ;;  %v528_v7 = vadd.f32 %v512_v5, %v496_v1  ;;  %v477_v8 = vpop.f32.mrb[30].mxu0  ;;  %974 = vmatpush3.bf16.xpose.msra.mxu1 %v971_v3  ;;  %v606_v18 = vsel %vm604_vm6, %v605_v12, %v603_v11 }
 0x1b8   : > { %v497_v9 = vmul.f32 %v477_v8, %v477_v8  ;;  %v479_v10 = vpop.f32.mrb[31].mxu0  ;;  %v608_v13 = vmul.f32 %v1089_v6, %v525_v39 }
 0x1b9   : > { %1094 = vrsqrt.f32 %v528_v7  ;;  %v513_v14 = vmul.f32 %v479_v10, %v479_v10  ;;  %vm630_vm12 = vcmp.eq.f32.partialorder %v528_v7, inf  ;;  %v633_v36 = vand.u32 2147483648, %v528_v7 }
 0x1ba   : > { %v610_v16 = vsel %vm609_vm5, %v525_v39, %v608_v13  ;;  %vm632_vm14 = vcmp.eq.f32.partialorder %v528_v7, 0.0 }
 0x1bb   : > { %v1091_v0 = vpop.eup %1090  ;;  %v529_v17 = vadd.f32 %v513_v14, %v497_v9  ;;  %v613_v19 = vsel %vm611_vm7, %v612_v15, %v610_v16 }
 0x1bc   : > { %v975_v20 = vpack.c.bf16 %v613_v19, %v606_v18  ;;  %v615_v21 = vmul.f32 %v1091_v0, %v1636_v49 }
 0x1bd   : > { %1096 = vrsqrt.f32 %v529_v17  ;;  %vm637_vm13 = vcmp.eq.f32.partialorder %v529_v17, inf  ;;  %v640_v37 = vand.u32 2147483648, %v529_v17  ;;  %vm639_vm15 = vcmp.eq.f32.partialorder %v529_v17, 0.0 }
 0x1be   : > { %976 = vmatprep.subr.bf16.mxu1 %v975_v20  ;;  %v617_v23 = vsel %vm616_vm8, %v1636_v49, %v615_v21 }
 0x1bf   : > { %v1093_v22 = vpop.eup %1092  ;;  %978 = vmatpush3.bf16.xpose.msra.mxu1 %v975_v20  ;;  %v620_v29 = vsel %vm618_vm10, %v619_v25, %v617_v23 }
 0x1c0   : > { %v622_v24 = vmul.f32 %v1093_v22, %v527_v60 }
 0x1c2   : > { %v624_v27 = vsel %vm623_vm9, %v527_v60, %v622_v24 }
 0x1c3   : > { %v1095_v28 = vpop.eup %1094  ;;  %v627_v30 = vsel %vm625_vm11, %v626_v26, %v624_v27 }
 0x1c4   : > { %v979_v31 = vpack.c.bf16 %v627_v30, %v620_v29  ;;  %v629_v32 = vmul.f32 %v1095_v28, %v528_v7 }
 0x1c6   : > { %980 = vmatprep.subr.bf16.mxu1 %v979_v31  ;;  %v631_v34 = vsel %vm630_vm12, %v528_v7, %v629_v32 }
 0x1c7   : > { %v1097_v33 = vpop.eup %1096  ;;  %982 = vmatpush3.bf16.xpose.msra.mxu1 %v979_v31  ;;  %v634_v39 = vsel %vm632_vm14, %v633_v36, %v631_v34 }
 0x1c8   : > { %v636_v35 = vmul.f32 %v1097_v33, %v529_v17 }
 0x1ca   : > { %v638_v38 = vsel %vm637_vm13, %v529_v17, %v636_v35 }
 0x1cb   : > { %v641_v40 = vsel %vm639_vm15, %v640_v37, %v638_v38 }
 0x1cc   : > { %v983_v41 = vpack.c.bf16 %v641_v40, %v634_v39 }
 0x1ce   : > { %984 = vmatprep.subr.bf16.mxu1 %v983_v41 }
 0x1cf   : > { %986 = vmatpush3.bf16.xpose.msra.mxu1 %v983_v41 }
 0x1d6   : > { %921 = vmatmul.mubr.f32.vlgmr.msra.gmra.mrb[0].mxu1 %v643_v42 }
 0x2a9   : > { %v922_v43 = vpop.f32.mrb[0].mxu1 }
 0x2aa   : > { %v720_v44 = vmax.f32 %v922_v43, 1e-05  ;;  %v710_v45 = vpop.f32.mrb[1].mxu1 }
 0x2ab   : > { %v719_v46 = vmax.f32 %v710_v45, 1e-05 }
 0x2ac   : > { %1098 = vlog2.f32 %v720_v44 }
 0x2ad   : > { %1100 = vlog2.f32 %v719_v46 }
 0x2b6   : > { %v1099_v47 = vpop.eup %1098  ;;  %734 = sbr.rel (%p1718_p4) target bundleno = 703 (0x2bf), region = 56 }
 0x2b7   : > { %v1101_v49 = vpop.eup %1100  ;;  %v724_v50 = vmul.f32 0.6931472, %v1099_v47 }
 0x2b8   : > { %v722_v52 = vmul.f32 0.6931472, %v1101_v49 }
 0x2b9   : > { %v728_v53 = vsub.f32 %v724_v50, %v726_v48 }
 0x2ba   : > { %v727_v54 = vsub.f32 %v722_v52, %v725_v51 }
 0x2bb   : > { %v730_v55 = vand.u32 2147483647, %v728_v53 }
 0x2bc   : > { %v729_v56 = vand.u32 2147483647, %v727_v54 }
 0x2bd   : > { %736 = vst [vmem:[#allocation10 + $0x8] sm:$0xff] %v730_v55 }
 0x2be   : > { %735 = vst [vmem:[#allocation10] sm:$0xff] %v729_v56 }
 0x2bf PF: > { %p1719_p0 = scmp.eq.s32.totalorder %s1348_s19, 0 }
 0x2c1   : > { %740 = sbr.rel (%p1719_p0) target bundleno = 714 (0x2ca), region = 60 }
 0x2c5   : > { %v741_v57 = vld [vmem:[#allocation10] sm:$0xff] (!%p1719_p0) }
 0x2c6   : > { %v742_v58 = vld [vmem:[#allocation10 + $0x8] sm:$0xff] (!%p1719_p0)  ;;  %v743_v59 = vadd.f32 (!%p1719_p0), %v741_v57, %v729_v56 }
 0x2c7   : > { %v744_v60 = vadd.f32 (!%p1719_p0), %v742_v58, %v730_v55 }
 0x2c8   : > { %745 = vst [vmem:[#allocation10] sm:$0xff] %v743_v59 }
 0x2c9   : > { %746 = vst [vmem:[#allocation10 + $0x8] sm:$0xff] %v744_v60 }
 0x2ca PF: > { %p1022_p5 = scmp.eq.s32.totalorder %s1348_s19, 1  ;;  %s1301_s25 = smov [#allocation10]  }
 0x2cb   : > { %s753_s12 = sshll.u32 %s1301_s25, 4  ;;  %s754_s12 = int_to_ptr.vmem [resolvable:$true] %s753_s12 }
 0x2cc   : > { %s1218_s21 = scalar_lea.vmem %s754_s12, 256  ;;  %p1225_p10 = scmp.lt.s32.totalorder %s754_s12, %s754_s12 }
 0x2cd   : > { %p1219_p9 = scmp.ne.s32.totalorder %s754_s12, %s1218_s21  ;;  %p1226_p2 = scmp.lt.s32.totalorder %s1218_s21, %s1218_s21 }
 0x2cf   : > { %p1220_p13 = pnand %p1219_p9, %p1022_p5  ;;  %p1227_p6 = por %p1226_p2, %p1225_p10 }
 0x2d1   : > { %p1221_p1 = pneg %p1220_p13 }
 0x2d3   : > { %p1228_p7 = pnand %p1227_p6, %p1221_p1 }
 0x2d5   : > { %1231 = shalt.err (!%p1228_p7)
}
 0x2d6   : > { %s1232_s30 = scalar_lea.hbm %s1704_s4, 256 }
 0x2d7   : > { %p1233_p8 = scmp.ne.s32.totalorder %s1704_s4, %s1232_s30  ;;  %p1238_p12 = scmp.lt.u32.totalorder %s1232_s30, %s1704_s4 }
 0x2d9   : > { %p1234_p3 = pnand %p1233_p8, %p1022_p5 }
 0x2db   : > { %p1235_p11 = pneg %p1234_p3 }
 0x2dd   : > { %p1240_p4 = pnand %p1238_p12, %p1235_p11 }
 0x2df   : > { %1243 = shalt.err (!%p1240_p4)
}
 0x2e0   : > { %s1302_s9 = smov 128   ;;  %s1303_s28 = smov 8  }
 0x2e1   : > { %1000 = dma.vmem_to_hbm [thread:$0]  (%p1022_p5), %s754_s12, 256, %s1704_s4, [#allocation4], %s1302_s9, %s1302_s9, %s1303_s28  }
 0x2e2   : > { %1273 = dma.done.wait (%p1022_p5), [#allocation4], 256  }
 0x2e3   : > { %1275 = vsyncadd (%p1022_p5), [#allocation4], 4294967040 }
 0x2e4 PF: > { %p19_p0 = scmp.ge.s32.totalorder %s1351_s20, 4   ;;  %s1720_s15 = smov %s1282_s16 }
 0x2e5   : > { %s1721_s16 = smov %s1286_s17  ;;  %s1722_s17 = smov %s1361_s23 }
 0x2e6   : > { %s1723_s18 = smov %s1351_s20  ;;  %21 = sbr.rel (!%p19_p0) target bundleno = 7 (0x7), region = 102 }
 0x2ed   :  { %769 = vsyncpa [#allocation3], 1 }
 0x2ee   :  { %771 = vsyncpa [#allocation3 + $0x1], 1 }
 0x2ef   :  { %772 = vsyncpa [#allocation6], 1 }
 0x2f0   :  { %773 = vsyncpa [#allocation9], 1 }
 0x2f1   :  { %775 = vsyncpa [#allocation9 + $0x1], 1 }
 0x2f2   :  { %776 = vsyncpa [#allocation4], 1 }
 0x2f3   :  { %778 = vsyncpa [#allocation4 + $0x1], 1 }

</bundles_post_ra>
